<compile_context>
chip_gen: v7x
topology: tpu7x:2x2x1
jax: 0.10.0
libtpu: 0.0.40
codegen_flags: <defaults>
</compile_context>

<pallas_src>
import jax
import jax.numpy as jnp
from jax.experimental import pallas as pl
from jax.experimental.pallas import tpu as pltpu

INPUT_SIZE = 11
HIDDEN = 50
NUM_CLASSES = 6


def mlp_kernel(x_ref, w1_ref, b1_ref, w2_ref, b2_ref, o_ref):
    # x_ref: [11, TB] bf16   w1_ref: [50, 11] bf16   b1_ref: [50, 1] f32
    # w2_ref: [6, 50] bf16   b2_ref: [6, 1]  f32     o_ref:  [6, TB] f32
    x = x_ref[...]
    # fc1: bf16 MXU matmul, f32 accumulation; bias + ReLU in f32 on the VPU.
    h = jnp.dot(w1_ref[...], x, preferred_element_type=jnp.float32)      # [50, TB]
    h = jnp.maximum(h + b1_ref[...], 0.0)
    # fc2: cast activations back to bf16 for the MXU, accumulate in f32.
    y = jnp.dot(w2_ref[...], h.astype(w2_ref.dtype),
                preferred_element_type=jnp.float32)                       # [6, TB]
    o_ref[...] = (y + b2_ref[...]).astype(o_ref.dtype)


def mlp_forward(x, w1, b1, w2, b2, *, block_b=256):
    """Forward pass of the wine-quality MLP.

    x:  [B, 11] float32  (row = sample, PyTorch Linear convention)
    w1: [50, 11], b1: [50]   (PyTorch fc1.weight / fc1.bias)
    w2: [6, 50],  b2: [6]    (PyTorch fc2.weight / fc2.bias)
    returns: [B, 6] float32 logits
    """
    B = x.shape[0]
    # Lane-aligned batch tile: at least one full 128-lane vreg, at most block_b.
    tile_b = min(block_b, max(128, ((B + 127) // 128) * 128))
    n_tiles = pl.cdiv(B, tile_b)
    Bp = n_tiles * tile_b

    # Layout plumbing on the XLA side: pad batch to a tile multiple, put batch
    # on the lane axis, bf16 for MXU inputs, biases as [F, 1] f32 columns.
    x_t = jnp.pad(x, ((0, Bp - B), (0, 0))).T.astype(jnp.bfloat16)       # [11, Bp]
    w1_b = w1.astype(jnp.bfloat16)                                       # [50, 11]
    w2_b = w2.astype(jnp.bfloat16)                                       # [6, 50]
    b1_c = b1.reshape(HIDDEN, 1).astype(jnp.float32)
    b2_c = b2.reshape(NUM_CLASSES, 1).astype(jnp.float32)

    flops = 2 * Bp * (INPUT_SIZE * HIDDEN + HIDDEN * NUM_CLASSES)
    bytes_accessed = (Bp * INPUT_SIZE * 2            # x in (bf16)
                      + Bp * NUM_CLASSES * 4         # logits out (f32)
                      + w1_b.size * 2 + w2_b.size * 2
                      + b1_c.size * 4 + b2_c.size * 4)

    out_t = pl.pallas_call(
        mlp_kernel,
        out_shape=jax.ShapeDtypeStruct((NUM_CLASSES, Bp), jnp.float32),
        grid_spec=pltpu.PrefetchScalarGridSpec(
            num_scalar_prefetch=0,
            grid=(n_tiles,),
            in_specs=[
                # Batch-tiled activations (lane-dense: last dim = tile_b).
                pl.BlockSpec((INPUT_SIZE, tile_b), lambda i: (0, i)),
                # Weights / biases: constant index_map -> VMEM-resident.
                pl.BlockSpec((HIDDEN, INPUT_SIZE), lambda i: (0, 0)),
                pl.BlockSpec((HIDDEN, 1), lambda i: (0, 0)),
                pl.BlockSpec((NUM_CLASSES, HIDDEN), lambda i: (0, 0)),
                pl.BlockSpec((NUM_CLASSES, 1), lambda i: (0, 0)),
            ],
            out_specs=pl.BlockSpec((NUM_CLASSES, tile_b), lambda i: (0, i)),
        ),
        compiler_params=pltpu.CompilerParams(
            # Independent batch tiles: sharded across both TCs on v7x.
            dimension_semantics=("parallel",),
        ),
        cost_estimate=pl.CostEstimate(
            flops=flops, transcendentals=0, bytes_accessed=bytes_accessed),
    )(x_t, w1_b, b1_c, w2_b, b2_c)

    # Back to the PyTorch [B, num_classes] layout, dropping batch padding.
    return out_t.T[:B]


def init_params(key):
    # PyTorch default Linear init: U(-1/sqrt(fan_in), 1/sqrt(fan_in)),
    # weights in PyTorch layout [out_features, in_features].
    k1, k2, k3, k4 = jax.random.split(key, 4)
    bound1 = 1.0 / jnp.sqrt(INPUT_SIZE)
    bound2 = 1.0 / jnp.sqrt(HIDDEN)
    w1 = jax.random.uniform(k1, (HIDDEN, INPUT_SIZE), jnp.float32,
                            minval=-bound1, maxval=bound1)
    b1 = jax.random.uniform(k2, (HIDDEN,), jnp.float32,
                            minval=-bound1, maxval=bound1)
    w2 = jax.random.uniform(k3, (NUM_CLASSES, HIDDEN), jnp.float32,
                            minval=-bound2, maxval=bound2)
    b2 = jax.random.uniform(k4, (NUM_CLASSES,), jnp.float32,
                            minval=-bound2, maxval=bound2)
    return w1, b1, w2, b2


def reference_forward_f32(x, w1, b1, w2, b2):
    h = jnp.maximum(x @ w1.T + b1, 0.0)
    return h @ w2.T + b2


def reference_forward_bf16(x, w1, b1, w2, b2):
    # Mirrors the kernel's mixed precision: bf16 MXU inputs, f32 accumulation.
    h = jnp.dot(x.astype(jnp.bfloat16), w1.T.astype(jnp.bfloat16),
                preferred_element_type=jnp.float32) + b1
    h = jnp.maximum(h, 0.0)
    return jnp.dot(h.astype(jnp.bfloat16), w2.T.astype(jnp.bfloat16),
                   preferred_element_type=jnp.float32) + b2


if __name__ == "__main__":
    key = jax.random.PRNGKey(0)
    kx, kp = jax.random.split(key)
    w1, b1, w2, b2 = init_params(kp)

    # Small shape consistent with the module (11 wine features).
    batch = 8
    x = jax.random.normal(kx, (batch, INPUT_SIZE), jnp.float32)

    out = jax.block_until_ready(mlp_forward(x, w1, b1, w2, b2))
    assert out.shape == (batch, NUM_CLASSES)

    ref_bf16 = reference_forward_bf16(x, w1, b1, w2, b2)
    assert jnp.allclose(out, ref_bf16, atol=1e-4, rtol=1e-4), "mismatch vs bf16 ref"
    ref_f32 = reference_forward_f32(x, w1, b1, w2, b2)
    assert jnp.allclose(out, ref_f32, atol=5e-2), "mismatch vs f32 ref"

    # Non-multiple-of-tile batch: exercises padding + the multi-tile grid.
    batch2 = 300
    x2 = jax.random.normal(kx, (batch2, INPUT_SIZE), jnp.float32)
    out2 = jax.block_until_ready(mlp_forward(x2, w1, b1, w2, b2, block_b=128))
    assert out2.shape == (batch2, NUM_CLASSES)
    ref2 = reference_forward_bf16(x2, w1, b1, w2, b2)
    assert jnp.allclose(out2, ref2, atol=1e-4, rtol=1e-4), "mismatch at batch=300"

    print("KERNEL_OK")
</pallas_src>

<mosaic_0001>
module attributes {stable_mosaic.version = 11 : i64} {
  func.func @mlp_kernel(%arg0: i32, %arg1: memref<11x128xbf16, #tpu.memory_space<vmem>>, %arg2: memref<50x11xbf16, #tpu.memory_space<vmem>>, %arg3: memref<50x1xf32, #tpu.memory_space<vmem>>, %arg4: memref<6x50xbf16, #tpu.memory_space<vmem>>, %arg5: memref<6x1xf32, #tpu.memory_space<vmem>>, %arg6: memref<6x128xf32, #tpu.memory_space<vmem>>) attributes {dimension_semantics = [#tpu.dimension_semantics<parallel>], iteration_bounds = array<i64: 1>, scalar_prefetch = 0 : i64, scratch_operands = 0 : i64, tpu.core_type = #tpu.core_type<tc>, window_params = [{transform_indices = @transform_0, window_bounds = array<i64: 11, 128>}, {pipeline_mode = #tpu.pipeline_mode<synchronous>, transform_indices = @transform_1, window_bounds = array<i64: 50, 11>}, {pipeline_mode = #tpu.pipeline_mode<synchronous>, transform_indices = @transform_2, window_bounds = array<i64: 50, 1>}, {pipeline_mode = #tpu.pipeline_mode<synchronous>, transform_indices = @transform_3, window_bounds = array<i64: 6, 50>}, {pipeline_mode = #tpu.pipeline_mode<synchronous>, transform_indices = @transform_4, window_bounds = array<i64: 6, 1>}, {transform_indices = @transform_5, window_bounds = array<i64: 6, 128>}]} {
    %c0 = arith.constant 0 : index
    %c0_0 = arith.constant 0 : index
    %0 = vector.load %arg1[%c0, %c0_0] : memref<11x128xbf16, #tpu.memory_space<vmem>>, vector<11x128xbf16>
    %c0_1 = arith.constant 0 : index
    %c0_2 = arith.constant 0 : index
    %1 = vector.load %arg2[%c0_1, %c0_2] : memref<50x11xbf16, #tpu.memory_space<vmem>>, vector<50x11xbf16>
    %cst = arith.constant dense<0.000000e+00> : vector<50x128xf32>
    %2 = tpu.matmul %1, %0, %cst {dimension_numbers = #tpu.dot_dimension_numbers<[1], [0], [0], [1], [0, 0, 1, 1], [], []>} : vector<50x11xbf16>, vector<11x128xbf16>, vector<50x128xf32> -> vector<50x128xf32>
    %c0_3 = arith.constant 0 : index
    %c0_4 = arith.constant 0 : index
    %3 = vector.load %arg3[%c0_3, %c0_4] : memref<50x1xf32, #tpu.memory_space<vmem>>, vector<50x1xf32>
    %4 = vector.broadcast %3 : vector<50x1xf32> to vector<50x128xf32>
    %5 = arith.addf %2, %4 : vector<50x128xf32>
    %cst_5 = arith.constant 0.000000e+00 : f32
    %6 = vector.broadcast %cst_5 : f32 to vector<50x128xf32>
    %7 = arith.maximumf %5, %6 : vector<50x128xf32>
    %c0_6 = arith.constant 0 : index
    %c0_7 = arith.constant 0 : index
    %8 = vector.load %arg4[%c0_6, %c0_7] : memref<6x50xbf16, #tpu.memory_space<vmem>>, vector<6x50xbf16>
    %9 = arith.truncf %7 : vector<50x128xf32> to vector<50x128xbf16>
    %cst_8 = arith.constant dense<0.000000e+00> : vector<6x128xf32>
    %10 = tpu.matmul %8, %9, %cst_8 {dimension_numbers = #tpu.dot_dimension_numbers<[1], [0], [0], [1], [0, 0, 1, 1], [], []>} : vector<6x50xbf16>, vector<50x128xbf16>, vector<6x128xf32> -> vector<6x128xf32>
    %c0_9 = arith.constant 0 : index
    %c0_10 = arith.constant 0 : index
    %11 = vector.load %arg5[%c0_9, %c0_10] : memref<6x1xf32, #tpu.memory_space<vmem>>, vector<6x1xf32>
    %12 = vector.broadcast %11 : vector<6x1xf32> to vector<6x128xf32>
    %13 = arith.addf %10, %12 : vector<6x128xf32>
    %c0_11 = arith.constant 0 : index
    %c0_12 = arith.constant 0 : index
    %14 = vector.load %arg6[%c0_11, %c0_12] : memref<6x128xf32, #tpu.memory_space<vmem>>, vector<6x128xf32>
    tpu.vector_store %arg6[%c0_11, %c0_12], %13 {strides = array<i32>} : memref<6x128xf32, #tpu.memory_space<vmem>>, vector<6x128xf32>,
    return
  }
  func.func @transform_0(%arg0: i32) -> (i32, i32) {
    %c0_i32 = arith.constant 0 : i32
    %c0_i32_0 = arith.constant 0 : i32
    return %c0_i32, %arg0 : i32, i32
  }
  func.func @transform_1(%arg0: i32) -> (i32, i32) {
    %c0_i32 = arith.constant 0 : i32
    %c0_i32_0 = arith.constant 0 : i32
    %c0_i32_1 = arith.constant 0 : i32
    return %c0_i32, %c0_i32_0 : i32, i32
  }
  func.func @transform_2(%arg0: i32) -> (i32, i32) {
    %c0_i32 = arith.constant 0 : i32
    %c0_i32_0 = arith.constant 0 : i32
    %c0_i32_1 = arith.constant 0 : i32
    return %c0_i32, %c0_i32_0 : i32, i32
  }
  func.func @transform_3(%arg0: i32) -> (i32, i32) {
    %c0_i32 = arith.constant 0 : i32
    %c0_i32_0 = arith.constant 0 : i32
    %c0_i32_1 = arith.constant 0 : i32
    return %c0_i32, %c0_i32_0 : i32, i32
  }
  func.func @transform_4(%arg0: i32) -> (i32, i32) {
    %c0_i32 = arith.constant 0 : i32
    %c0_i32_0 = arith.constant 0 : i32
    %c0_i32_1 = arith.constant 0 : i32
    return %c0_i32, %c0_i32_0 : i32, i32
  }
  func.func @transform_5(%arg0: i32) -> (i32, i32) {
    %c0_i32 = arith.constant 0 : i32
    %c0_i32_0 = arith.constant 0 : i32
    return %c0_i32, %arg0 : i32, i32
  }
}

</mosaic_0001>

<bundles_post_ra>
// kernel: tpu_custom_call.1
= control target key start
LH: loop header
LB: loop body
LE: loop exit
PB: predicated region body
PF: predicated region fallthrough
CT: control target
= control target key end

     0   :  { %vm109_vm0 = vcmask 1044480   ;;  %vm110_vm1 = vcmask 1045504   ;;  %v339_v2 = vmov 65535   ;;  %vm96_vm2 = vcmask 89088   ;;  %s432_s0 = inlined_call_operand.vmem [shape: bf16[11,128], index: 0, kind: input, shape index: {}]   ;;  %s433_s1 = inlined_call_operand.vmem [shape: bf16[50,11], index: 1, kind: input, shape index: {}]   ;;  %s434_s2 = inlined_call_operand.vmem [shape: f32[50,1], index: 2, kind: input, shape index: {}]   ;;  %s435_s3 = inlined_call_operand.vmem [shape: bf16[6,50], index: 3, kind: input, shape index: {}]   ;;  %s436_s4 = inlined_call_operand.vmem [shape: f32[6,1], index: 4, kind: input, shape index: {}]   ;;  %s437_s5 = inlined_call_operand.hbm [shape: f32[6,128], index: 5, kind: output, shape index: {}]  }
   0x1   :  { %v310_v0 = vld [vmem:[%s432_s0] sm:$0x3f]   ;;  %v111_v3 = vsel %vm109_vm0, 4294967295, %v339_v2  ;;  %v340_v6 = vmov 0   ;;  %v33_v8 = vld [vmem:[%s434_s2 + $0x10] sm:$0xff]  ;;  %v312_v9 = vld [vmem:[%s433_s1 + $0x8] sm:$0xff]  }
   0x2   :  { %v311_v1 = vld [vmem:[%s433_s1] sm:$0xff]   ;;  %v112_v4 = vsel %vm110_vm1, %v111_v3, 0  ;;  %308 = vset.pattern.permute.xlu0 %v340_v6  ;;  %309 = vset.pattern.permute.xlu1 %v340_v6  ;;  %v313_v10 = vld [vmem:[%s433_s1 + $0x10] sm:$0xff]   ;;  %v32_v11 = vld [vmem:[%s434_s2 + $0x8] sm:$0xff] }
   0x3   :  { %283 = vmatprep.mubr.msk.bf16.mxu0 %vm96_vm2, %v311_v1  ;;  %v114_v5 = vand.u32 %v310_v0, %v112_v4  ;;  %v31_v7 = vld [vmem:[%s434_s2] sm:$0xff]  ;;  %50 = vperm.xlu1 %309, %v33_v8   ;;  %v34_v12 = vld [vmem:[%s434_s2 + $0x18] sm:$0xff] }
   0x4   :  { %40 = vperm.xlu0 %308, %v31_v7  }
   0x5   :  { %281 = vmatprep.subr.bf16.mxu0 %v114_v5 }
   0x6   :  { %282 = vmatpush3.bf16.msra.mxu0 %v114_v5 }
   0x7   :  { %10 = vsyncpa [#allocation3], 0  ;;  %55 = vperm.xlu1 %309, %v34_v12   ;;  %v35_v13 = vld [vmem:[%s434_s2 + $0x20] sm:$0xff]  ;;  %v36_v14 = vld [vmem:[%s434_s2 + $0x28] sm:$0xff]  ;;  %v341_v18 = vmov 0.0   ;;  %vm342_vm3 = vmmov 0  }
   0x8   :  { %45 = vperm.xlu0 %308, %v32_v11   ;;  %v314_v15 = vld [vmem:[%s433_s1 + $0x18] ss:$0 sps:$4 sm:$0x11]   ;;  %v37_v16 = vld [vmem:[%s434_s2 + $0x30] sm:$0x3]  ;;  %291 = vmatprep.subr.bf16.mxu1 %v341_v18  ;;  %vm202_vm4 = vcmask 1040384  }
   0x9   :  { %284 = vmatmul.mubr.msk.bf16.vlgmr.msra.gmra.mrb[0].mxu0 %vm96_vm2, %v312_v9  ;;  %v192_v17 = vld [vmem:[%s436_s4] sm:$0x3f]  ;;  %299 = vmatprep.mubr.msk.bf16.mxu1 %vm342_vm3, %v341_v18  ;;  %vm198_vm5 = vcmask 408576   ;;  %s343_s4 = smov [#allocation2]  }
   0xa   :  { %287 = vmatprep.mubr.msk.bf16.mxu0 %vm96_vm2, %v313_v10  ;;  %v187_v53 = vld [vmem:[%s435_s3] sm:$0x7]  ;;  %s253_s18 = sshll.u32 %s343_s4, 4  ;;  %s254_s18 = int_to_ptr.vmem [resolvable:$true] %s253_s18 }
   0xb   :  { %65 = vperm.xlu1 %309, %v36_v14   ;;  %s315_s19 = scalar_lea.vmem %s254_s18, 128  ;;  %p320_p1 = scmp.lt.s32.totalorder %s254_s18, %s254_s18 }
   0xc   :  { %60 = vperm.xlu0 %308, %v35_v13   ;;  %p316_p0 = scmp.ne.s32.totalorder %s254_s18, %s315_s19  ;;  %p321_p2 = scmp.lt.s32.totalorder %s315_s19, %s315_s19 }
   0xe   :  { %p322_p3 = por %p321_p2, %p320_p1 }
   0xf   :  { %195 = vperm.xlu1 %309, %v192_v17  }
  0x10   :  { %70 = vperm.xlu0 %308, %v37_v16   ;;  %p323_p4 = pnand %p322_p3, %p316_p0 }
  0x11   :  { %288 = vmatmul.mubr.msk.bf16.gmra.mrb[4].mxu0 %vm96_vm2, %v314_v15 }
  0x82   :  { %v51_v20 = vpop.permute.xlu1 %50 }
  0x83   :  { %v41_v19 = vpop.permute.xlu0 %40 }
  0x86   :  { %v56_v23 = vpop.permute.xlu1 %55 }
  0x87   :  { %v46_v21 = vpop.permute.xlu0 %45 }
  0x8a   :  { %v66_v44 = vpop.permute.xlu1 %65 }
  0x8b   :  { %v61_v26 = vpop.permute.xlu0 %60 }
  0x8e   :  { %v196_v54 = vpop.permute.xlu1 %195 }
  0x8f   :  { %v71_v37 = vpop.permute.xlu0 %70 }
  0xdc   :  { %v285_v22 = vpop.f32.mrb[0].mxu0 }
  0xdd   :  { %v159_v24 = vadd.f32 %v285_v22, %v51_v20  ;;  %v150_v25 = vpop.f32.mrb[1].mxu0 }
  0xde   :  { %v151_v27 = vadd.f32 %v150_v25, %v41_v19  ;;  %v286_v28 = vpop.f32.mrb[2].mxu0 }
  0xdf   :  { %v162_v29 = vadd.f32 %v286_v28, %v56_v23  ;;  %v153_v30 = vpop.f32.mrb[3].mxu0  ;;  %v182_v32 = vmax.f32 %v159_v24, 0.0 }
  0xe0   :  { %v154_v31 = vadd.f32 %v153_v30, %v46_v21  ;;  %v180_v34 = vmax.f32 %v151_v27, 0.0 }
  0xe1   :  { %v183_v33 = vmax.f32 %v162_v29, 0.0 }
  0xe2   :  { %v181_v35 = vmax.f32 %v154_v31, 0.0 }
  0xe3   :  { %v189_v36 = vpack.c.bf16 %v183_v33, %v182_v32 }
  0xe4   :  { %v289_v38 = vpop.f32.mrb[4].mxu0  ;;  %v188_v39 = vpack.c.bf16 %v181_v35, %v180_v34 }
  0xe5   :  { %v175_v40 = vadd.f32 %v289_v38, %v71_v37  ;;  %v166_v41 = vpop.f32.mrb[5].mxu0 }
  0xe6   :  { %v167_v42 = vadd.f32 %v166_v41, %v61_v26  ;;  %v290_v43 = vpop.f32.mrb[6].mxu0  ;;  %292 = vmatpush3.bf16.msra.mxu1 %v188_v39 }
  0xe7   :  { %v169_v45 = vpop.f32.mrb[7].mxu0  ;;  %293 = vmatprep.subr.bf16.mxu1 %v341_v18  ;;  %v186_v47 = vmax.f32 %v175_v40, 0.0 }
  0xe8   :  { %v170_v46 = vadd.f32 %v169_v45, %v66_v44  ;;  %v184_v48 = vmax.f32 %v167_v42, 0.0 }
  0xe9   :  { %v191_v51 = vpack.c.bf16 %v186_v47, %v186_v47 }
  0xea   :  { %v185_v49 = vmax.f32 %v170_v46, 0.0  ;;  %294 = vmatpush3.bf16.msra.mxu1 %v189_v36 }
  0xeb   :  { %295 = vmatprep.subr.bf16.mxu1 %v341_v18  ;;  %v204_v52 = vsel %vm202_vm4, %v191_v51, 0 }
  0xec   :  { %v190_v50 = vpack.c.bf16 %v185_v49, %v184_v48 }
  0xee   :  { %296 = vmatpush3.bf16.msra.mxu1 %v190_v50 }
  0xef   :  { %297 = vmatprep.subr.bf16.mxu1 %v341_v18 }
  0xf2   :  { %298 = vmatpush3.bf16.msra.mxu1 %v204_v52 }
  0xf5   :  { %300 = vmatmul.mubr.msk.bf16.vlgmr.msra.gmra.mrb[0].mxu1 %vm198_vm5, %v187_v53 }
 0x1c8   :  { %v240_v55 = vpop.f32.mrb[0].mxu1 }
 0x1c9   :  { %v241_v56 = vadd.f32 %v240_v55, %v196_v54  ;;  %v301_v57 = vpop.f32.mrb[1].mxu1 }
 0x1ca   :  { %v243_v58 = vpop.f32.mrb[2].mxu1 }
 0x1cb   :  { %246 = vst [vmem:[#allocation2] sm:$0x3f] %v241_v56  ;;  %v302_v59 = vpop.f32.mrb[3].mxu1 }
 0x1cc   :  { %326 = shalt.err (!%p323_p4)
}
 0x1cd   :  { %s327_s21 = scalar_lea.hbm %s437_s5, 128 }
 0x1ce   :  { %p328_p5 = scmp.ne.s32.totalorder %s437_s5, %s327_s21  ;;  %p331_p6 = scmp.lt.u32.totalorder %s327_s21, %s437_s5 }
 0x1d0   :  { %p333_p7 = pnand %p331_p6, %p328_p5 }
 0x1d2   :  { %336 = shalt.err (!%p333_p7)
}
 0x1d3   :  { %256 = dma.vmem_to_hbm [thread:$0]  %s254_s18, 128, %s437_s5, [#allocation3]  }
 0x1d4   :  { %337 = dma.done.wait [#allocation3], 128  }
 0x1d5   :  { %338 = vsyncadd [#allocation3], 4294967168 }
 0x1d6   :  { %260 = vsyncpa [#allocation3], 1 }

</bundles_post_ra>
